<compile_context>
chip_gen: v5e
topology: v5e:2x2
jax: 0.10.0
libtpu: 0.0.40
codegen_flags: <defaults>
</compile_context>

<pallas_src>
import jax
import jax.numpy as jnp
from jax.experimental import pallas as pl
from jax.experimental.pallas import tpu as pltpu


def _scale_kernel(w_ref, d_ref, x_ref, o_ref):
    # w_ref, d_ref: (TR, 1)   x_ref, o_ref: (TR, L)
    # Broadcast (TR, 1) over the lane axis; pure VPU streaming op.
    o_ref[...] = w_ref[...] + d_ref[...] * x_ref[...]


def scale_forward(weight, bias, x, *,
                  data_budget_bytes=24 << 20,   # x+out double-buffered budget
                  max_rows_per_step=512):       # keep several grid steps when big
    """weight, bias: (N, C); x: (N, C, H, W) -> (N, C, H, W)."""
    N, C, H, W = x.shape
    assert weight.shape == (N, C) and bias.shape == (N, C)
    R, L = N * C, H * W

    itemsize = jnp.dtype(x.dtype).itemsize
    # Sublane-packing granule so vld/vst stay unmasked for sub-32-bit dtypes.
    sub = {4: 8, 2: 16, 1: 32}.get(itemsize, 8)

    x2 = x.reshape(R, L)
    w2 = weight.reshape(R, 1).astype(x.dtype)
    d2 = (bias - weight).reshape(R, 1).astype(x.dtype)   # precomputed delta

    # Rows per grid step: largest sublane-aligned count whose double-buffered
    # x + out tiles fit the data budget; or the whole R if it's small.
    row_bytes = L * itemsize
    max_tr = max(sub, data_budget_bytes // (4 * row_bytes))  # 2 streams x 2 bufs
    tr = min(R, max_tr, max_rows_per_step)
    if tr != R:
        tr = max(sub, (tr // sub) * sub)
    grid_r = pl.cdiv(R, tr)

    # Explicit VMEM cap: double-buffered x/out tiles + tiny w/delta + headroom.
    needed = 4 * tr * row_bytes + 8 * tr * itemsize
    vmem_limit = int(min(max(needed + (4 << 20), 16 << 20), 48 << 20))

    out2 = pl.pallas_call(
        _scale_kernel,
        out_shape=jax.ShapeDtypeStruct((R, L), x.dtype),
        grid_spec=pltpu.PrefetchScalarGridSpec(
            num_scalar_prefetch=0,
            grid=(grid_r,),
            in_specs=[
                pl.BlockSpec((tr, 1), lambda i: (i, 0)),   # weight (resident per row block)
                pl.BlockSpec((tr, 1), lambda i: (i, 0)),   # delta = bias - weight
                pl.BlockSpec((tr, L), lambda i: (i, 0)),   # input slab, lane-dense
            ],
            out_specs=pl.BlockSpec((tr, L), lambda i: (i, 0)),
        ),
        compiler_params=pltpu.CompilerParams(
            dimension_semantics=("parallel",),
            vmem_limit_bytes=vmem_limit,
        ),
    )(w2, d2, x2)

    return out2.reshape(N, C, H, W)


if __name__ == "__main__":
    N, C, H, W = 2, 4, 16, 16
    key = jax.random.PRNGKey(0)
    kx, kw, kb = jax.random.split(key, 3)

    x = jax.random.normal(kx, (N, C, H, W), dtype=jnp.float32)
    # Module __init__ uses zeros/ones; use deterministic random values instead
    # so the broadcast path is actually exercised.
    weight = jax.random.normal(kw, (N, C), dtype=jnp.float32)
    bias = jax.random.normal(kb, (N, C), dtype=jnp.float32)

    out = scale_forward(weight, bias, x)
    out = jax.block_until_ready(out)

    # Pure-JAX reference of the PyTorch forward (expand_as adds trailing 1s).
    w_e = weight[:, :, None, None]
    b_e = bias[:, :, None, None]
    ref = w_e + (b_e - w_e) * x
    assert out.shape == x.shape and out.dtype == x.dtype
    assert jnp.allclose(out, ref, atol=1e-6, rtol=1e-6)

    print("KERNEL_OK")
</pallas_src>

<mosaic_0001>
module attributes {stable_mosaic.version = 11 : i64} {
  func.func @_scale_kernel(%arg0: i32, %arg1: memref<8x1xf32, #tpu.memory_space<vmem>>, %arg2: memref<8x1xf32, #tpu.memory_space<vmem>>, %arg3: memref<8x256xf32, #tpu.memory_space<vmem>>, %arg4: memref<8x256xf32, #tpu.memory_space<vmem>>) attributes {dimension_semantics = [#tpu.dimension_semantics<parallel>], iteration_bounds = array<i64: 1>, scalar_prefetch = 0 : i64, scratch_operands = 0 : i64, tpu.core_type = #tpu.core_type<tc>, window_params = [{transform_indices = @transform_0, window_bounds = array<i64: 8, 1>}, {transform_indices = @transform_1, window_bounds = array<i64: 8, 1>}, {transform_indices = @transform_2, window_bounds = array<i64: 8, 256>}, {transform_indices = @transform_3, window_bounds = array<i64: 8, 256>}]} {
    %c0 = arith.constant 0 : index
    %c0_0 = arith.constant 0 : index
    %0 = vector.load %arg1[%c0, %c0_0] : memref<8x1xf32, #tpu.memory_space<vmem>>, vector<8x1xf32>
    %c0_1 = arith.constant 0 : index
    %c0_2 = arith.constant 0 : index
    %1 = vector.load %arg2[%c0_1, %c0_2] : memref<8x1xf32, #tpu.memory_space<vmem>>, vector<8x1xf32>
    %c0_3 = arith.constant 0 : index
    %c0_4 = arith.constant 0 : index
    %2 = vector.load %arg3[%c0_3, %c0_4] : memref<8x256xf32, #tpu.memory_space<vmem>>, vector<8x256xf32>
    %3 = vector.broadcast %1 : vector<8x1xf32> to vector<8x256xf32>
    %4 = arith.mulf %3, %2 : vector<8x256xf32>
    %5 = vector.broadcast %0 : vector<8x1xf32> to vector<8x256xf32>
    %6 = arith.addf %5, %4 : vector<8x256xf32>
    %c0_5 = arith.constant 0 : index
    %c0_6 = arith.constant 0 : index
    %7 = vector.load %arg4[%c0_5, %c0_6] : memref<8x256xf32, #tpu.memory_space<vmem>>, vector<8x256xf32>
    tpu.vector_store %arg4[%c0_5, %c0_6], %6 {strides = array<i32>} : memref<8x256xf32, #tpu.memory_space<vmem>>, vector<8x256xf32>,
    return
  }
  func.func @transform_0(%arg0: i32) -> (i32, i32) {
    %c0_i32 = arith.constant 0 : i32
    %c0_i32_0 = arith.constant 0 : i32
    return %arg0, %c0_i32 : i32, i32
  }
  func.func @transform_1(%arg0: i32) -> (i32, i32) {
    %c0_i32 = arith.constant 0 : i32
    %c0_i32_0 = arith.constant 0 : i32
    return %arg0, %c0_i32 : i32, i32
  }
  func.func @transform_2(%arg0: i32) -> (i32, i32) {
    %c0_i32 = arith.constant 0 : i32
    %c0_i32_0 = arith.constant 0 : i32
    return %arg0, %c0_i32 : i32, i32
  }
  func.func @transform_3(%arg0: i32) -> (i32, i32) {
    %c0_i32 = arith.constant 0 : i32
    %c0_i32_0 = arith.constant 0 : i32
    return %arg0, %c0_i32 : i32, i32
  }
}

</mosaic_0001>

<bundles_post_ra>
// kernel: tpu_custom_call.1
= control target key start
LH: loop header
LB: loop body
LE: loop exit
PB: predicated region body
PF: predicated region fallthrough
CT: control target
= control target key end

     0   :  { %v80_v1 = vmov 0   ;;  %s117_s0 = inlined_call_operand.vmem [shape: f32[8,1], index: 0, kind: input, shape index: {}]   ;;  %s118_s1 = inlined_call_operand.vmem [shape: f32[8,1], index: 1, kind: input, shape index: {}]   ;;  %s119_s2 = inlined_call_operand.vmem [shape: f32[8,256], index: 2, kind: input, shape index: {}]   ;;  %s120_s3 = inlined_call_operand.hbm [shape: f32[8,256], index: 3, kind: output, shape index: {}]  }
   0x1   :  { %v16_v0 = vld [vmem:[%s118_s1] sm:$0xff]  ;;  %53 = vset.pattern.permute.xlu0 %v80_v1 }
   0x2   :  { %8 = vsyncpa [#allocation3], 0  ;;  %21 = vperm.xlu0 %53, %v16_v0   ;;  %v15_v2 = vld [vmem:[%s117_s0] sm:$0xff]  ;;  %v18_v5 = vld [vmem:[%s119_s2 + $0x8] sm:$0xff]  ;;  %s81_s1 = smov [#allocation2]   ;;  %s42_s23 = sshll.u32 %s120_s3, 4  ;;  %s43_s23 = int_to_ptr.hbm [resolvable:$true] %s42_s23 }
   0x3   :  { %v17_v4 = vld [vmem:[%s119_s2] sm:$0xff]  ;;  %s40_s20 = sshll.u32 %s81_s1, 4  ;;  %s41_s20 = int_to_ptr.vmem [resolvable:$true] %s40_s20 }
   0xa   :  { %28 = vperm.xlu0 %53, %v15_v2  }
  0x74   :  { %v22_v3 = vpop.permute.xlu0 %21 }
  0x75   :  { %v24_v6 = vmul.f32 %v22_v3, %v17_v4  ;;  %v25_v7 = vmul.f32 %v22_v3, %v18_v5 }
  0x7c   :  { %v29_v8 = vpop.permute.xlu0 %28 }
  0x7d   :  { %v31_v9 = vadd.f32 %v29_v8, %v24_v6  ;;  %v32_v10 = vadd.f32 %v29_v8, %v25_v7 }
  0x7f   :  { %33 = vst [vmem:[#allocation2] sm:$0xff] %v31_v9 }
  0x80   :  { %34 = vst [vmem:[#allocation2 + $0x8] sm:$0xff] %v32_v10 }
  0x81   :  { %45 = dma.vmem_to_hbm [thread:$0]  %s41_s20, 256, %s43_s23, [#allocation3]  }
  0x82   :  { %78 = dma.done.wait [#allocation3], 256  }
  0x83   :  { %79 = vsyncadd [#allocation3], 4294967040 }
  0x84   :  { %50 = vsyncpa [#allocation3], 1 }

</bundles_post_ra>
